<compile_context>
chip_gen: v7x
topology: tpu7x:2x2x1
jax: 0.10.0
libtpu: 0.0.40
codegen_flags: <defaults>
</compile_context>

<pallas_src>
import functools

import jax
import jax.numpy as jnp
from jax.experimental import pallas as pl
from jax.experimental.pallas import tpu as pltpu


def _round_up(n, m):
    return (n + m - 1) // m * m


def _tpu_vmem_capacity():
    """Physical VMEM bytes for the local TPU generation (conservative fallback)."""
    try:
        info = pltpu.get_tpu_info()
        cap = int(getattr(info, "vmem_capacity_bytes", 0))
        if cap > 0:
            return cap
    except Exception:
        pass
    return 64 * 1024 * 1024          # v7x-sized fallback (safe lower bound)


def _vmem_bytes(tb, in_dim, hid_p, out_p, x_itemsize):
    """Estimated per-kernel VMEM working set for a batch tile of `tb` rows."""
    x_b = 2 * tb * in_dim * x_itemsize                                 # double-buffered x tile
    w_b = (in_dim * hid_p + hid_p * out_p) * 2 + (hid_p + out_p) * 4   # Buffered(1) weights/biases
    h_b = tb * hid_p * (4 + 2)                                         # f32 h + bf16 copy for matmul 2
    l_b = 3 * tb * out_p * 4                                           # logits + softmax temporaries
    o_b = 2 * (tb * 4 + 2 * 128 * 4)                                   # outputs (double-buffered)
    return x_b + w_b + h_b + l_b + o_b


def _pick_tile(B, in_dim, hid_p, out_p, x_itemsize, block_b, budget):
    """Batch tile: multiple of 256 when possible, shrunk to fit the VMEM budget."""
    if block_b < 256:
        tb = min(block_b, B)                         # explicit small tile (testing)
    else:
        tb = min(_round_up(block_b, 256), _round_up(B, 256))
    while tb > 8 and _vmem_bytes(min(tb, B), in_dim, hid_p, out_p, x_itemsize) > budget:
        tb //= 2
    if tb >= B:
        return B            # single tile covering the whole batch: block == full array dims
    return max(8, _round_up(tb, 8))


def _mlp_kernel(*refs, batch_size, tile_rows, with_labels):
    if with_labels:
        (x_ref, w1_ref, b1_ref, w2_ref, b2_ref, y_ref, loss_ref, acc_ref) = refs
    else:
        (x_ref, w1_ref, b1_ref, w2_ref, b2_ref, pred_ref) = refs

    # ---- hot path: two MXU matmuls, bf16 operands / f32 accumulation ----
    x = x_ref[...].astype(jnp.bfloat16)                       # in-kernel cast (no wrapper pass)
    h = jnp.dot(x, w1_ref[...], preferred_element_type=jnp.float32) + b1_ref[...]
    h = jnp.maximum(h, 0.0).astype(jnp.bfloat16)               # ReLU, bf16 for matmul 2
    logits = (jnp.dot(h, w2_ref[...], preferred_element_type=jnp.float32)
              + b2_ref[...])                                    # (tb, out_p) f32
    # Padded class columns carry a ~finfo(f32).min/2 bias: exp() underflows to 0
    # and they can never win the argmax *as long as this math stays f32*.

    tb, c_pad = logits.shape
    cls_ids = jax.lax.broadcasted_iota(jnp.int32, (tb, c_pad), 1)

    # ---- argmax: first occurrence of the row max (matches torch.argmax) ----
    row_max = jnp.max(logits, axis=1, keepdims=True)            # (tb, 1)
    pred = jnp.min(jnp.where(logits == row_max, cls_ids, c_pad),
                   axis=1, keepdims=True).astype(jnp.int32)     # (tb, 1)

    if not with_labels:
        pred_ref[...] = pred
        return

    # ---- cross-entropy + accuracy: per-tile SUMS (wrapper divides by B) ----
    y = y_ref[...]                                               # (tb, 1) int32
    rows = (pl.program_id(0) * tile_rows
            + jax.lax.broadcasted_iota(jnp.int32, (tb, 1), 0))
    valid = rows < batch_size          # masks the partial last tile; the rows past
    # the batch hold uninitialized data, so jnp.where (not multiply) keeps any
    # NaN/Inf they produce out of the sums.

    lse = row_max + jnp.log(jnp.sum(jnp.exp(logits - row_max),
                                    axis=1, keepdims=True))      # (tb, 1)
    true_logit = jnp.sum(jnp.where(cls_ids == y, logits, 0.0),
                         axis=1, keepdims=True)                  # (tb, 1)
    loss_i = jnp.where(valid, lse - true_logit, 0.0)
    corr_i = jnp.where(valid & (pred == y), 1.0, 0.0)

    loss_ref[...] = jnp.broadcast_to(jnp.sum(loss_i, axis=0, keepdims=True),
                                     (1, 1, 128))                # lane-dense store
    acc_ref[...] = jnp.broadcast_to(jnp.sum(corr_i, axis=0, keepdims=True),
                                    (1, 1, 128))


def prepare_params(params):
    """One-time pad/cast of the Linear weights (hoisted out of model_forward).

    params = (w1, b1, w2, b2), stored transposed vs. PyTorch Linear:
      w1: (in_dim, hid_dim), b1: (hid_dim,), w2: (hid_dim, out_dim), b2: (out_dim,)
    Returns bf16 weights / f32 biases with hid/out lane-padded to multiples of 128.
    in_dim is left unpadded so x can be consumed as-is (no per-call x copy).
    """
    w1, b1, w2, b2 = params
    in_dim, hid = w1.shape
    out = w2.shape[1]
    hid_p, out_p = _round_up(hid, 128), _round_up(out, 128)
    # Sentinel bias for padded classes: large-negative, but safely inside f32
    # range so `logits - row_max` / exp() stay finite (exp underflows to 0).
    neg = float(jnp.finfo(jnp.float32).min) / 2.0
    w1_p = jnp.zeros((in_dim, hid_p), jnp.bfloat16).at[:, :hid].set(
        w1.astype(jnp.bfloat16))
    b1_p = jnp.zeros((1, hid_p), jnp.float32).at[0, :hid].set(
        b1.astype(jnp.float32))
    w2_p = jnp.zeros((hid_p, out_p), jnp.bfloat16).at[:hid, :out].set(
        w2.astype(jnp.bfloat16))
    b2_p = jnp.full((1, out_p), neg, jnp.float32).at[0, :out].set(
        b2.astype(jnp.float32))
    return (w1_p, b1_p, w2_p, b2_p)


def model_forward(x, prepared_params, y=None, *, block_b=1024):
    """Mirrors Model.forward: returns pred if y is None, else (loss, acc)."""
    w1, b1, w2, b2 = prepared_params
    B, in_dim = x.shape
    assert w1.shape[0] == in_dim, "x feature dim must match prepared w1"
    hid_p, out_p = w2.shape

    phys = _tpu_vmem_capacity()
    budget = int(phys * 0.70)                     # headroom for compiler scratch
    x_isz = x.dtype.itemsize
    tb = _pick_tile(B, in_dim, hid_p, out_p, x_isz, block_b, budget)
    n_tiles = -(-B // tb)
    est = _vmem_bytes(min(tb, B), in_dim, hid_p, out_p, x_isz)
    vmem_limit = max(32 * 1024 * 1024,
                     min(int(phys * 0.85), est + 32 * 1024 * 1024))

    x_spec = pl.BlockSpec((tb, in_dim), lambda i: (i, 0))

    # Weights/biases: constant block index -> VMEM-resident; single-buffered
    # (double-buffering a never-changing block only wastes VMEM, esp. on v7x).
    def resident(shape):
        return pl.BlockSpec(shape, lambda i: (0, 0), pipeline_mode=pl.Buffered(1))

    w1_spec, b1_spec = resident(w1.shape), resident(b1.shape)
    w2_spec, b2_spec = resident(w2.shape), resident(b2.shape)

    compiler_params = pltpu.CompilerParams(
        dimension_semantics=("parallel",),   # independent batch tiles (2 TCs on v7x)
        vmem_limit_bytes=int(vmem_limit),
    )

    flops = int(2 * B * (in_dim * hid_p + hid_p * out_p))
    bytes_in = int(B * in_dim * x_isz
                   + (in_dim * hid_p + hid_p * out_p) * 2 + (hid_p + out_p) * 4)

    if y is None:
        kernel = functools.partial(_mlp_kernel, batch_size=B, tile_rows=tb,
                                   with_labels=False)
        cost = pl.CostEstimate(flops=flops, transcendentals=0,
                               bytes_accessed=bytes_in + n_tiles * tb * 4)
        pred = pl.pallas_call(
            kernel,
            grid=(n_tiles,),
            in_specs=[x_spec, w1_spec, b1_spec, w2_spec, b2_spec],
            out_specs=pl.BlockSpec((tb, 1), lambda i: (i, 0)),
            out_shape=jax.ShapeDtypeStruct((n_tiles * tb, 1), jnp.int32),
            compiler_params=compiler_params,
            cost_estimate=cost,
        )(x, w1, b1, w2, b2)
        return pred[:B, 0]

    y2 = jnp.asarray(y).astype(jnp.int32).reshape(B, 1)
    y_spec = pl.BlockSpec((tb, 1), lambda i: (i, 0))
    part_spec = pl.BlockSpec((1, 1, 128), lambda i: (i, 0, 0))

    kernel = functools.partial(_mlp_kernel, batch_size=B, tile_rows=tb,
                               with_labels=True)
    cost = pl.CostEstimate(flops=flops, transcendentals=int(B * out_p),
                           bytes_accessed=bytes_in + B * 4 + n_tiles * 2 * 128 * 4)
    loss_part, acc_part = pl.pallas_call(
        kernel,
        grid=(n_tiles,),
        in_specs=[x_spec, w1_spec, b1_spec, w2_spec, b2_spec, y_spec],
        out_specs=(part_spec, part_spec),
        out_shape=(jax.ShapeDtypeStruct((n_tiles, 1, 128), jnp.float32),
                   jax.ShapeDtypeStruct((n_tiles, 1, 128), jnp.float32)),
        compiler_params=compiler_params,
        cost_estimate=cost,
    )(x, w1, b1, w2, b2, y2)

    inv_b = jnp.float32(1.0 / B)         # per-tile SUMS -> global means
    loss = jnp.sum(loss_part[:, 0, 0]) * inv_b
    acc = jnp.sum(acc_part[:, 0, 0]) * inv_b
    return loss, acc


def init_params(key, in_dim, hid_dim, out_dim):
    """Deterministic init mimicking nn.Linear defaults (uniform +/- 1/sqrt(fan_in))."""
    k1, k2, k3, k4 = jax.random.split(key, 4)
    b1_bound = 1.0 / (in_dim ** 0.5)
    b2_bound = 1.0 / (hid_dim ** 0.5)
    w1 = jax.random.uniform(k1, (in_dim, hid_dim), jnp.float32, -b1_bound, b1_bound)
    b1 = jax.random.uniform(k2, (hid_dim,), jnp.float32, -b1_bound, b1_bound)
    w2 = jax.random.uniform(k3, (hid_dim, out_dim), jnp.float32, -b2_bound, b2_bound)
    b2 = jax.random.uniform(k4, (out_dim,), jnp.float32, -b2_bound, b2_bound)
    return (w1, b1, w2, b2)


if __name__ == "__main__":
    # Small shapes chosen to exercise every masking path:
    # batch not a multiple of the tile, in_dim / hid_dim not multiples of 128.
    B, IN_DIM, HID_DIM, OUT_DIM = 37, 200, 64, 10

    key = jax.random.PRNGKey(0)
    kx, ky, kp = jax.random.split(key, 3)
    x = jax.random.normal(kx, (B, IN_DIM), jnp.float32)
    y = jax.random.randint(ky, (B,), 0, OUT_DIM, jnp.int32)
    params = init_params(kp, IN_DIM, HID_DIM, OUT_DIM)
    prepared = prepare_params(params)     # one-time weight pad/cast (hoisted)

    # Tiny tile -> multi-tile grid with a partial (masked) final tile.
    pred_a = model_forward(x, prepared, block_b=16)
    loss_a, acc_a = model_forward(x, prepared, y, block_b=16)
    # Default tile -> single tile covering the whole (short) batch.
    pred_b = model_forward(x, prepared)
    loss_b, acc_b = model_forward(x, prepared, y)
    jax.block_until_ready((pred_a, loss_a, acc_a, pred_b, loss_b, acc_b))

    # ---- pure-JAX f32 reference (bf16-tolerant checks) ----
    w1, b1, w2, b2 = params
    h_ref = jnp.maximum(x @ w1 + b1, 0.0)
    logits_ref = h_ref @ w2 + b2
    pred_ref = jnp.argmax(logits_ref, axis=1)
    lse_ref = jax.scipy.special.logsumexp(logits_ref, axis=1)
    loss_ref = jnp.mean(lse_ref - logits_ref[jnp.arange(B), y])
    acc_ref = jnp.mean((pred_ref == y).astype(jnp.float32))

    for pred in (pred_a, pred_b):
        assert pred.shape == (B,) and pred.dtype == jnp.int32
        assert bool(jnp.all((pred >= 0) & (pred < OUT_DIM)))
        assert float(jnp.mean((pred == pred_ref).astype(jnp.float32))) >= 0.8
    for loss, acc in ((loss_a, acc_a), (loss_b, acc_b)):
        assert abs(float(loss) - float(loss_ref)) < 0.1
        assert abs(float(acc) - float(acc_ref)) <= 0.2 + 1e-6

    print("KERNEL_OK")
</pallas_src>

<mosaic_0001>
module attributes {stable_mosaic.version = 11 : i64} {
  func.func @_mlp_kernel(%arg0: i32, %arg1: memref<16x200xf32, #tpu.memory_space<vmem>>, %arg2: memref<200x128xbf16, #tpu.memory_space<vmem>>, %arg3: memref<1x128xf32, #tpu.memory_space<vmem>>, %arg4: memref<128x128xbf16, #tpu.memory_space<vmem>>, %arg5: memref<1x128xf32, #tpu.memory_space<vmem>>, %arg6: memref<16x1xi32, #tpu.memory_space<vmem>>) attributes {dimension_semantics = [#tpu.dimension_semantics<parallel>], iteration_bounds = array<i64: 3>, scalar_prefetch = 0 : i64, scratch_operands = 0 : i64, tpu.core_type = #tpu.core_type<tc>, window_params = [{transform_indices = @transform_0, window_bounds = array<i64: 16, 200>}, {pipeline_mode = #tpu.pipeline_mode<synchronous>, transform_indices = @transform_1, window_bounds = array<i64: 200, 128>}, {pipeline_mode = #tpu.pipeline_mode<synchronous>, transform_indices = @transform_2, window_bounds = array<i64: 1, 128>}, {pipeline_mode = #tpu.pipeline_mode<synchronous>, transform_indices = @transform_3, window_bounds = array<i64: 128, 128>}, {pipeline_mode = #tpu.pipeline_mode<synchronous>, transform_indices = @transform_4, window_bounds = array<i64: 1, 128>}, {transform_indices = @transform_5, window_bounds = array<i64: 16, 1>}]} {
    %c0 = arith.constant 0 : index
    %c0_0 = arith.constant 0 : index
    %0 = vector.load %arg1[%c0, %c0_0] : memref<16x200xf32, #tpu.memory_space<vmem>>, vector<16x200xf32>
    %1 = arith.truncf %0 : vector<16x200xf32> to vector<16x200xbf16>
    %c0_1 = arith.constant 0 : index
    %c0_2 = arith.constant 0 : index
    %2 = vector.load %arg2[%c0_1, %c0_2] : memref<200x128xbf16, #tpu.memory_space<vmem>>, vector<200x128xbf16>
    %cst = arith.constant dense<0.000000e+00> : vector<16x128xf32>
    %3 = tpu.matmul %1, %2, %cst {dimension_numbers = #tpu.dot_dimension_numbers<[1], [0], [0], [1], [0, 0, 1, 1], [], []>} : vector<16x200xbf16>, vector<200x128xbf16>, vector<16x128xf32> -> vector<16x128xf32>
    %c0_3 = arith.constant 0 : index
    %c0_4 = arith.constant 0 : index
    %4 = vector.load %arg3[%c0_3, %c0_4] : memref<1x128xf32, #tpu.memory_space<vmem>>, vector<1x128xf32>
    %5 = vector.broadcast %4 : vector<1x128xf32> to vector<16x128xf32>
    %6 = arith.addf %3, %5 : vector<16x128xf32>
    %cst_5 = arith.constant 0.000000e+00 : f32
    %7 = vector.broadcast %cst_5 : f32 to vector<16x128xf32>
    %8 = arith.maximumf %6, %7 : vector<16x128xf32>
    %9 = arith.truncf %8 : vector<16x128xf32> to vector<16x128xbf16>
    %c0_6 = arith.constant 0 : index
    %c0_7 = arith.constant 0 : index
    %10 = vector.load %arg4[%c0_6, %c0_7] : memref<128x128xbf16, #tpu.memory_space<vmem>>, vector<128x128xbf16>
    %cst_8 = arith.constant dense<0.000000e+00> : vector<16x128xf32>
    %11 = tpu.matmul %9, %10, %cst_8 {dimension_numbers = #tpu.dot_dimension_numbers<[1], [0], [0], [1], [0, 0, 1, 1], [], []>} : vector<16x128xbf16>, vector<128x128xbf16>, vector<16x128xf32> -> vector<16x128xf32>
    %c0_9 = arith.constant 0 : index
    %c0_10 = arith.constant 0 : index
    %12 = vector.load %arg5[%c0_9, %c0_10] : memref<1x128xf32, #tpu.memory_space<vmem>>, vector<1x128xf32>
    %13 = vector.broadcast %12 : vector<1x128xf32> to vector<16x128xf32>
    %14 = arith.addf %11, %13 : vector<16x128xf32>
    %15 = tpu.iota {dimensions = array<i32: 1>} : vector<16x128xi32>
    %cst_11 = arith.constant dense<0xFF800000> : vector<16xf32>
    %16 = vector.multi_reduction <maximumf>, %14, %cst_11 [1] : vector<16x128xf32> to vector<16xf32>
    %17 = vector.shape_cast %16 : vector<16xf32> to vector<16x1xf32>
    %18 = vector.broadcast %17 : vector<16x1xf32> to vector<16x128xf32>
    %19 = arith.cmpf oeq, %14, %18 : vector<16x128xf32>
    %c128_i32 = arith.constant 128 : i32
    %20 = vector.broadcast %c128_i32 : i32 to vector<16x128xi32>
    %21 = arith.select %19, %15, %20 : vector<16x128xi1>, vector<16x128xi32>
    %cst_12 = arith.constant dense<2147483647> : vector<16xi32>
    %22 = vector.multi_reduction <minsi>, %21, %cst_12 [1] : vector<16x128xi32> to vector<16xi32>
    %23 = vector.shape_cast %22 : vector<16xi32> to vector<16x1xi32>
    %c0_13 = arith.constant 0 : index
    %c0_14 = arith.constant 0 : index
    %24 = vector.load %arg6[%c0_13, %c0_14] : memref<16x1xi32, #tpu.memory_space<vmem>>, vector<16x1xi32>
    tpu.vector_store %arg6[%c0_13, %c0_14], %23 {strides = array<i32>} : memref<16x1xi32, #tpu.memory_space<vmem>>, vector<16x1xi32>,
    return
  }
  func.func @transform_0(%arg0: i32) -> (i32, i32) {
    %c0_i32 = arith.constant 0 : i32
    %c0_i32_0 = arith.constant 0 : i32
    return %arg0, %c0_i32 : i32, i32
  }
  func.func @transform_1(%arg0: i32) -> (i32, i32) {
    %c0_i32 = arith.constant 0 : i32
    %c0_i32_0 = arith.constant 0 : i32
    %c0_i32_1 = arith.constant 0 : i32
    return %c0_i32, %c0_i32_0 : i32, i32
  }
  func.func @transform_2(%arg0: i32) -> (i32, i32) {
    %c0_i32 = arith.constant 0 : i32
    %c0_i32_0 = arith.constant 0 : i32
    %c0_i32_1 = arith.constant 0 : i32
    return %c0_i32, %c0_i32_0 : i32, i32
  }
  func.func @transform_3(%arg0: i32) -> (i32, i32) {
    %c0_i32 = arith.constant 0 : i32
    %c0_i32_0 = arith.constant 0 : i32
    %c0_i32_1 = arith.constant 0 : i32
    return %c0_i32, %c0_i32_0 : i32, i32
  }
  func.func @transform_4(%arg0: i32) -> (i32, i32) {
    %c0_i32 = arith.constant 0 : i32
    %c0_i32_0 = arith.constant 0 : i32
    %c0_i32_1 = arith.constant 0 : i32
    return %c0_i32, %c0_i32_0 : i32, i32
  }
  func.func @transform_5(%arg0: i32) -> (i32, i32) {
    %c0_i32 = arith.constant 0 : i32
    %c0_i32_0 = arith.constant 0 : i32
    return %arg0, %c0_i32 : i32, i32
  }
}

</mosaic_0001>

<bundles_post_ra>
// kernel: tpu_custom_call.1
= control target key start
LH: loop header
LB: loop body
LE: loop exit
PB: predicated region body
PF: predicated region fallthrough
CT: control target
= control target key end

     0   :  { %10 = vsyncpa [#allocation3], 0  ;;  %s1238_s0 = inlined_call_operand.hbm [shape: f32[37,200], index: 0, kind: input, shape index: {}]   ;;  %s1239_s1 = inlined_call_operand.hbm [shape: bf16[200,128], index: 1, kind: input, shape index: {}]   ;;  %s1240_s2 = inlined_call_operand.vmem [shape: f32[1,128], index: 2, kind: input, shape index: {}]   ;;  %s1241_s3 = inlined_call_operand.hbm [shape: bf16[128,128], index: 3, kind: input, shape index: {}]   ;;  %s1242_s4 = inlined_call_operand.vmem [shape: f32[1,128], index: 4, kind: input, shape index: {}]   ;;  %s1243_s5 = inlined_call_operand.vmem [shape: s32[48,1], index: 5, kind: output, shape index: {}]  }
   0x1   :  { %12 = vsyncpa [#allocation3 + $0x1], 0 }
   0x2   :  { %13 = vsyncpa [#allocation5], 0  ;;  %s1019_s18 = smov 0   ;;  %s1021_s19 = smov 0  }
   0x3   :  { %s1023_s20 = smov 0   ;;  %s1025_s21 = smov 0  }
   0x4 LB: > { %s694_s22 = sadd.s32 4294967295, %s977_s21   ;;  %s1039_s23 = sadd.s32 1, %s977_s21   ;;  %s977_s21 = sphi %s1025_s21, %s1260_s21   ;;  %s973_s20 = sphi %s1023_s20, %s1259_s20   ;;  %s969_s19 = sphi %s1021_s19, %s1258_s19   ;;  %s965_s18 = sphi %s1019_s18, %s1257_s18  }
   0x5   : > { %s23_s24 = ssub.s32 %s977_s21, %s1039_s23  ;;  %s26_s25 = sadd.s32 1, %s973_s20 }
   0x6   : > { %p24_p0 = scmp.eq.s32.totalorder %s23_s24, 0  ;;  %p33_p1 = scmp.ne.s32.totalorder %s973_s20, %s969_s19 }
   0x7   : > { %p34_p2 = scmp.eq.s32.totalorder %s977_s21, 0  ;;  %p39_p3 = scmp.ne.s32.totalorder %s969_s19, %s965_s18 }
   0x8   : > { %s1049_s26 = scalar_select %p24_p0, %s973_s20, %s26_s25  }
   0x9   : > { %p1051_p4 = por %p34_p2, %p33_p1  ;;  %p1057_p5 = scmp.eq.s32.totalorder %s694_s22, 0 }
   0xa   : > { %p696_p6 = scmp.ge.s32.totalorder %s977_s21, 1  ;;  %p160_p7 = scmp.lt.s32.totalorder %s977_s21, 4 }
   0xb   : > { %s1248_s27 = scalar_select %p1051_p4, 1, 0 }
   0xc   : > { %s1249_s28 = scalar_select %p1057_p5, 1, 0 }
   0xd   : > { %p1065_p8 = por %p1057_p5, %p39_p3  ;;  %p1069_p9 = pnand %p696_p6, %p160_p7 }
   0xe   : > { %s979_s6 = smov [#allocation4]   ;;  %s980_s9 = smov [#allocation6]  }
   0xf   : > { %s1250_s29 = scalar_select %p1065_p8, 1, 0 }
  0x10   : > { %s1251_s30 = scalar_select %p1069_p9, 1, 0 }
  0x11   : > { %s172_s7 = sshll.u32 %s979_s6, 4  ;;  %p782_p10 = pneg %p1069_p9  ;;  %s173_s7 = int_to_ptr.vmem [resolvable:$true] %s172_s7 }
  0x12   : > { %s188_s10 = sshll.u32 %s980_s9, 4  ;;  %s855_s13 = scalar_lea.hbm %s1239_s1, 1600  ;;  %s1081_s10 = int_to_ptr.vmem [resolvable:$true] %s188_s10 }
  0x13   : > { %p1077_p11 = pnand %p782_p10, %p1057_p5  ;;  %p856_p12 = scmp.ne.s32.totalorder %s1239_s1, %s855_s13 }
  0x14   : > { %p862_p2 = scmp.lt.u32.totalorder %s855_s13, %s1239_s1 }
  0x15   : > { %p857_p13 = pneg %p1077_p11 }
  0x17   : > { %p858_p0 = pnand %p857_p13, %p856_p12 }
  0x19   : > { %p859_p1 = pneg %p858_p0 }
  0x1b   : > { %p864_p3 = pnand %p862_p2, %p859_p1 }
  0x1d   : > { %867 = shalt.err (!%p864_p3)
}
  0x1e   : > { %s868_s18 = scalar_lea.vmem %s173_s7, 1600  ;;  %p876_p5 = scmp.lt.s32.totalorder %s173_s7, %s173_s7 }
  0x1f   : > { %p869_p6 = scmp.ne.s32.totalorder %s173_s7, %s868_s18  ;;  %p877_p8 = scmp.lt.s32.totalorder %s868_s18, %s868_s18 }
  0x21   : > { %p871_p7 = pnand %p869_p6, %p857_p13  ;;  %p878_p9 = por %p877_p8, %p876_p5 }
  0x23   : > { %p872_p10 = pneg %p871_p7 }
  0x25   : > { %p879_p4 = pnand %p878_p9, %p872_p10 }
  0x27   : > { %882 = shalt.err (!%p879_p4)
}
  0x28   : > { %s981_s24 = smov 64   ;;  %s982_s25 = smov 4  }
  0x29   : > { %785 = dma.hbm_to_vmem [thread:$0]  (!%p1077_p11), %s1239_s1, 1600, %s173_s7, [#allocation5], %s981_s24, %s981_s24, %s982_s25  }
  0x2a   : > { %s883_s13 = scalar_lea.hbm %s1241_s3, 1024 }
  0x2b   : > { %p884_p12 = scmp.ne.s32.totalorder %s1241_s3, %s883_s13  ;;  %p890_p8 = scmp.lt.u32.totalorder %s883_s13, %s1241_s3 }
  0x2d   : > { %p886_p4 = pnand %p884_p12, %p857_p13 }
  0x2f   : > { %p887_p5 = pneg %p886_p4 }
  0x31   : > { %p892_p9 = pnand %p890_p8, %p887_p5 }
  0x33   : > { %895 = shalt.err (!%p892_p9)
}
  0x34   : > { %s896_s7 = scalar_lea.vmem %s1081_s10, 1024  ;;  %p904_p3 = scmp.lt.s32.totalorder %s1081_s10, %s1081_s10 }
  0x35   : > { %p897_p0 = scmp.ne.s32.totalorder %s1081_s10, %s896_s7  ;;  %p905_p6 = scmp.lt.s32.totalorder %s896_s7, %s896_s7 }
  0x37   : > { %p899_p1 = pnand %p897_p0, %p857_p13  ;;  %p906_p7 = por %p905_p6, %p904_p3 }
  0x39   : > { %p900_p2 = pneg %p899_p1 }
  0x3b   : > { %p907_p10 = pnand %p906_p7, %p900_p2 }
  0x3d   : > { %910 = shalt.err (!%p907_p10)
}
  0x3e   : > { %788 = dma.hbm_to_vmem [thread:$0]  (!%p1077_p11), %s1241_s3, 1024, %s1081_s10, [#allocation5], %s981_s24, %s981_s24, %s982_s25  }
  0x3f   : > { %p699_p12 = scmp.ge.s32.totalorder %s977_s21, 3 }
  0x40   : > { %p1253_p4 = scmp.ne.s32.totalorder (!%p699_p12), %s1248_s27, 0 }
  0x41   : > { %201 = sbr.rel (%p699_p12) target bundleno = 107 (0x6b), region = 32 }
  0x48   : > { %204 = sbr.rel (!%p1253_p4) target bundleno = 107 (0x6b), region = 36  ;;  %s205_s9 = sand.u32 (%p1253_p4), 1, %s973_s20  }
  0x49   : > { %s701_s11 = sshll.u32 (%p1253_p4), %s977_s21, 1  ;;  %s700_s12 = sshll.u32 (%p1253_p4), %s205_s9, 5 }
  0x4a   : > { %s211_s13 = ssub.s32 (%p1253_p4), 5, %s701_s11  ;;  %s1138_s15 = scalar_lea.sflag (%p1253_p4), [#allocation3], %s205_s9 }
  0x4b   : > { %p212_p13 = scmp.lt.s32.totalorder (%p1253_p4), %s211_s13, 2  ;;  %s209_s10 = scalar_lea.vmem (%p1253_p4), [#allocation2], %s700_s12 }
  0x4f   : > { %s1262_s13 = smov (!%p212_p13, %s211_s13), 2 }
  0x50   : > { %s1135_s8 = sshll.u32 %s1262_s13, 8 }
  0x51   : > { %s217_s14 = ssub.s32 512, %s1135_s8 }
  0x52   : > { %218 = vsyncadd %s1138_s15, %s217_s14  ;;  %p704_p11 = scmp.ne.s32.totalorder %s1135_s8, 0  ;;  %s743_s27 = sshll.u32 %s977_s21, 9 }
  0x53   : > { %s1146_s16 = scalar_lea.hbm %s1238_s0, %s743_s27  ;;  %s224_s17 = sshll.u32 %s209_s10, 4  ;;  %s1148_s17 = int_to_ptr.vmem [resolvable:$true] %s224_s17 }
  0x54   : > { %s911_s7 = scalar_lea.hbm %s1146_s16, %s1135_s8  ;;  %s915_s9 = scalar_lea.hbm %s1238_s0, 1280 }
  0x55   : > { %p912_p5 = scmp.ne.s32.totalorder %s1146_s16, %s911_s7  ;;  %p916_p0 = scmp.lt.u32.totalorder %s1146_s16, %s1238_s0 }
  0x56   : > { %p917_p1 = scmp.lt.u32.totalorder %s915_s9, %s911_s7  ;;  %p919_p3 = scmp.lt.u32.totalorder %s911_s7, %s1146_s16 }
  0x57   : > { %p913_p8 = pnand %p912_p5, %p704_p11 }
  0x58   : > { %p918_p2 = por %p917_p1, %p916_p0 }
  0x59   : > { %p914_p9 = pneg %p913_p8 }
  0x5a   : > { %p920_p6 = por %p919_p3, %p918_p2 }
  0x5c   : > { %p921_p7 = pnand %p920_p6, %p914_p9 }
  0x5e   : > { %924 = shalt.err (!%p921_p7)
}
  0x5f   : > { %s925_s13 = scalar_lea.vmem %s1148_s17, %s1135_s8  ;;  %s983_s14 = smov [#allocation2]  }
  0x60   : > { %p926_p10 = scmp.ne.s32.totalorder %s1148_s17, %s925_s13  ;;  %s929_s10 = sshll.u32 %s983_s14, 4  ;;  %s930_s10 = int_to_ptr.vmem [resolvable:$false] %s929_s10 }
  0x61   : > { %s931_s27 = scalar_lea.vmem %s930_s10, 1024  ;;  %p932_p13 = scmp.lt.s32.totalorder %s1148_s17, %s930_s10 }
  0x62   : > { %p927_p12 = pnand %p926_p10, %p704_p11  ;;  %p933_p5 = scmp.lt.s32.totalorder %s931_s27, %s925_s13 }
  0x64   : > { %p928_p4 = pneg %p927_p12  ;;  %p934_p8 = por %p933_p5, %p932_p13 }
  0x66   : > { %p935_p0 = pnand %p934_p8, %p928_p4 }
  0x68   : > { %938 = shalt.err (!%p935_p0)
}
  0x69   : > { %s984_s24 = smov 256   ;;  %s985_s25 = smov 16  }
  0x6a   : > { %230 = dma.hbm_to_vmem [thread:$0]  (%p704_p11), %s1146_s16, %s1135_s8, %s1148_s17, %s1138_s15, %s984_s24, %s984_s24, %s985_s25  }
  0x6b PF: > { %p1254_p9 = scmp.ne.s32.totalorder %s1251_s30, 0 }
  0x6c   : > { %s238_s7 = sand.u32 (!%p1254_p9), 1, %s969_s19   ;;  %p1255_p1 = scmp.ne.s32.totalorder (!%p1254_p9), %s1250_s29, 0 }
  0x6d   : > { %236 = sbr.rel (%p1254_p9) target bundleno = 1050 (0x41a), region = 40  ;;  %s710_s18 = sshll.u32 (!%p1254_p9), %s238_s7, 5 }
  0x6e   : > { %s239_s6 = scalar_lea.sflag (!%p1254_p9), [#allocation3], %s238_s7  ;;  %s1178_s9 = scalar_lea.vmem (!%p1254_p9), [#allocation2], %s710_s18 }
  0x74   : > { %956 = dma.done.wait (%p1255_p1), %s239_s6, 512  }
  0x75   : > { %958 = vsyncadd (%p1255_p1), %s239_s6, 4294966784  ;;  %p1256_p2 = scmp.ne.s32.totalorder %s1249_s28, 0 }
  0x77   : > { %960 = dma.done.wait (%p1256_p2), [#allocation5], 2624  }
  0x78   : > { %962 = vsyncadd (%p1256_p2), [#allocation5], 4294964672  ;;  %v986_v0 = vmov 0   ;;  %v987_v1 = vmov 0.0   ;;  %v834_v2 = vld [vmem:[#allocation4] sm:$0xff]   ;;  %v835_v3 = vld [vmem:[#allocation4 + $0x8] sm:$0xff]   ;;  %v567_v47 = vlaneseq }
  0x79   : > { %411 = vmatprep.subr.bf16.mxu0 %v986_v0  ;;  %753 = vmatprep.subr.bf16.mxu1 %v987_v1  ;;  %v836_v4 = vld [vmem:[#allocation4 + $0x10] sm:$0xff]   ;;  %v837_v5 = vld [vmem:[#allocation4 + $0x18] sm:$0xff]   ;;  %v291_v6 = vld [vmem:[%s1178_s9 + $0x8] sm:$0xff]  ;;  %vm403_vm0 = vcmask 588800   ;;  %vm407_vm1 = vcmask 1043456   ;;  %vm988_vm2 = vmmov 0  }
  0x7a   : > { %412 = vmatpush1.bf16.msra.mxu0 %v834_v2  ;;  %v838_v7 = vld [vmem:[#allocation4 + $0x20] sm:$0xff]   ;;  %v293_v8 = vld [vmem:[%s1178_s9 + $0x18] sm:$0xff]  ;;  %v848_v11 = vld [vmem:[#allocation6 + $0x8] sm:$0xff]   ;;  %769 = vmatprep.mubr.msk.bf16.mxu1 %vm988_vm2, %v987_v1  ;;  %v568_v48 = vand.u32 127, %v567_v47  ;;  %s713_s15 = sshll.u32 %s694_s22, 1  ;;  %vm605_vm7 = vcmask 7168  }
  0x7b   : > { %413 = vmatprep.subr.bf16.mxu0 %v986_v0  ;;  %v295_v9 = vpack.c.bf16 %v293_v8, %v291_v6  ;;  %v847_v10 = vld [vmem:[#allocation6] sm:$0xff]   ;;  %v849_v13 = vld [vmem:[#allocation6 + $0x10] sm:$0xff]   ;;  %v850_v15 = vld [vmem:[#allocation6 + $0x18] sm:$0xff]   ;;  %p284_p11 = scmp.lt.s32.totalorder %s713_s15, 5 }
  0x7c   : > { %754 = vmatpush3.bf16.msra.mxu1 %v847_v10  ;;  %v839_v12 = vld [vmem:[#allocation4 + $0x28] sm:$0xff]   ;;  %v840_v14 = vld [vmem:[#allocation4 + $0x30] sm:$0xff]   ;;  %v841_v16 = vld [vmem:[#allocation4 + $0x38] sm:$0xff]  }
  0x7d   : > { %729 = vmatprep.mubr.msk.bf16.mxu0 %vm403_vm0, %v295_v9  ;;  %755 = vmatprep.subr.bf16.mxu1 %v987_v1  ;;  %v851_v17 = vld [vmem:[#allocation6 + $0x20] sm:$0xff]   ;;  %v852_v19 = vld [vmem:[#allocation6 + $0x28] sm:$0xff]   ;;  %v845_v22 = vld [vmem:[#allocation4 + $0x58] sm:$0xff]   ;;  %s1264_s15 = smov (!%p284_p11, %s713_s15), 5 }
  0x7e   : > { %414 = vmatpush1.bf16.msra.mxu0 %v835_v3  ;;  %v842_v18 = vld [vmem:[#allocation4 + $0x40] sm:$0xff]   ;;  %v843_v20 = vld [vmem:[#allocation4 + $0x48] sm:$0xff]   ;;  %v844_v21 = vld [vmem:[#allocation4 + $0x50] sm:$0xff]   ;;  %s714_s16 = sshll.u32 %s1264_s15, 3 }
  0x7f   : > { %415 = vmatprep.subr.bf16.mxu0 %v986_v0  ;;  %v846_v23 = vld [vmem:[#allocation4 + $0x60] ss:$0 sps:$4 sm:$0xff]   ;;  %v292_v25 = vld [vmem:[%s1178_s9 + $0x10] sm:$0xff]  ;;  %s287_s12 = scalar_lea.vmem %s1243_s5, %s714_s16 }
  0x80   : > { %756 = vmatpush3.bf16.msra.mxu1 %v848_v11  ;;  %v290_v24 = vld [vmem:[%s1178_s9] sm:$0xff]  ;;  %v409_v26 = vsel %vm407_vm1, %v846_v23, 0  ;;  %v853_v28 = vld [vmem:[#allocation6 + $0x30] sm:$0xff]  }
  0x81   : > { %757 = vmatprep.subr.bf16.mxu1 %v987_v1  ;;  %v294_v27 = vpack.c.bf16 %v292_v25, %v290_v24  ;;  %v854_v29 = vld [vmem:[#allocation6 + $0x38] sm:$0xff]  }
  0x82   : > { %416 = vmatpush1.bf16.msra.mxu0 %v836_v4  ;;  %v715_v30 = vld [vmem:[%s1240_s2] ss:$0 sm:$0xff] }
  0x83   : > { %417 = vmatprep.subr.bf16.mxu0 %v986_v0  ;;  %v730_v40 = vld [vmem:[%s1242_s4] ss:$0 sm:$0xff] }
  0x84   : > { %758 = vmatpush3.bf16.msra.mxu1 %v849_v13 }
  0x85   : > { %759 = vmatprep.subr.bf16.mxu1 %v987_v1 }
  0x86   : > { %418 = vmatpush1.bf16.msra.mxu0 %v837_v5 }
  0x87   : > { %419 = vmatprep.subr.bf16.mxu0 %v986_v0 }
  0x88   : > { %760 = vmatpush3.bf16.msra.mxu1 %v850_v15 }
  0x89   : > { %761 = vmatprep.subr.bf16.mxu1 %v987_v1 }
  0x8a   : > { %420 = vmatpush1.bf16.msra.mxu0 %v838_v7 }
  0x8b   : > { %421 = vmatprep.subr.bf16.mxu0 %v986_v0 }
  0x8c   : > { %762 = vmatpush3.bf16.msra.mxu1 %v851_v17 }
  0x8d   : > { %763 = vmatprep.subr.bf16.mxu1 %v987_v1 }
  0x8e   : > { %422 = vmatpush1.bf16.msra.mxu0 %v839_v12 }
  0x8f   : > { %423 = vmatprep.subr.bf16.mxu0 %v986_v0 }
  0x90   : > { %764 = vmatpush3.bf16.msra.mxu1 %v852_v19 }
  0x91   : > { %765 = vmatprep.subr.bf16.mxu1 %v987_v1 }
  0x92   : > { %424 = vmatpush1.bf16.msra.mxu0 %v840_v14 }
  0x93   : > { %425 = vmatprep.subr.bf16.mxu0 %v986_v0 }
  0x94   : > { %766 = vmatpush3.bf16.msra.mxu1 %v853_v28 }
  0x95   : > { %767 = vmatprep.subr.bf16.mxu1 %v987_v1 }
  0x96   : > { %426 = vmatpush1.bf16.msra.mxu0 %v841_v16 }
  0x97   : > { %427 = vmatprep.subr.bf16.mxu0 %v986_v0 }
  0x98   : > { %768 = vmatpush3.bf16.msra.mxu1 %v854_v29 }
  0x9a   : > { %428 = vmatpush1.bf16.msra.mxu0 %v842_v18 }
  0x9b   : > { %429 = vmatprep.subr.bf16.mxu0 %v986_v0 }
  0x9e   : > { %430 = vmatpush1.bf16.msra.mxu0 %v843_v20 }
  0x9f   : > { %431 = vmatprep.subr.bf16.mxu0 %v986_v0 }
  0xa2   : > { %432 = vmatpush1.bf16.msra.mxu0 %v844_v21 }
  0xa3   : > { %433 = vmatprep.subr.bf16.mxu0 %v986_v0 }
  0xa6   : > { %434 = vmatpush1.bf16.msra.mxu0 %v845_v22 }
  0xa7   : > { %435 = vmatprep.subr.bf16.mxu0 %v986_v0 }
  0xaa   : > { %436 = vmatpush1.bf16.msra.mxu0 %v409_v26 }
  0xad   : > { %444 = vmatmul.mubr.bf16.vlgmr.msra.gmra.mrb[0].mxu0 %v294_v27 }
 0x180   : > { %v445_v31 = vpop.f32.mrb[0].mxu0 }
 0x181   : > { %v446_v32 = vadd.f32 %v715_v30, %v445_v31  ;;  %v447_v33 = vpop.f32.mrb[1].mxu0 }
 0x182   : > { %v448_v34 = vpop.f32.mrb[2].mxu0 }
 0x183   : > { %v449_v35 = vadd.f32 %v715_v30, %v448_v34  ;;  %v450_v36 = vpop.f32.mrb[3].mxu0  ;;  %v452_v37 = vmax.f32 %v446_v32, 0.0 }
 0x185   : > { %v453_v38 = vmax.f32 %v449_v35, 0.0 }
 0x187   : > { %v454_v39 = vpack.c.bf16 %v453_v38, %v452_v37 }
 0x189   : > { %770 = vmatmul.mubr.bf16.vlgmr.msra.gmra.mrb[0].mxu1 %v454_v39 }
 0x25c   : > { %v560_v41 = vpop.f32.mrb[0].mxu1 }
 0x25d   : > { %v561_v42 = vadd.f32 %v730_v40, %v560_v41  ;;  %v771_v43 = vpop.f32.mrb[1].mxu1 }
 0x25e   : > { %v563_v44 = vpop.f32.mrb[2].mxu1 }
 0x25f   : > { %569 = vmax.xlane.f32.xlu0 %v561_v42  ;;  %v772_v45 = vpop.f32.mrb[3].mxu1  ;;  %v564_v46 = vadd.f32 %v730_v40, %v563_v44 }
 0x263   : > { %571 = vmax.xlane.f32.xlu0 %v564_v46 }
 0x2ec   : > { %v570_v49 = vpop.xlane.xlu0 %569 }
 0x2ed   : > { %vm573_vm3 = vcmp.eq.f32.partialorder %v561_v42, %v570_v49 }
 0x2ee   : > { %v575_v50 = vsel %vm573_vm3, %v568_v48, 128 }
 0x2ef   : > { %v578_v51 = vshra.s32 %v575_v50, 16  ;;  %v577_v57 = vand.u32 65535, %v575_v50 }
 0x2f0   : > { %v572_v52 = vpop.xlane.xlu0 %571 }
 0x2f1   : > { %vm574_vm4 = vcmp.eq.f32.partialorder %v564_v46, %v572_v52  ;;  %v580_v53 = vcvt.s32.f32 %v578_v51  ;;  %v579_v60 = vcvt.s32.f32 %v577_v57 }
 0x2f2   : > { %v576_v54 = vsel %vm574_vm4, %v568_v48, 128 }
 0x2f3   : > { %581 = vmin.xlane.f32.xlu1 %v580_v53  ;;  %v592_v55 = vshra.s32 %v576_v54, 16  ;;  %v591_v58 = vand.u32 65535, %v576_v54 }
 0x2f5   : > { %v594_v56 = vcvt.s32.f32 %v592_v55  ;;  %v593_v63 = vcvt.s32.f32 %v591_v58 }
 0x2f7   : > { %595 = vmin.xlane.f32.xlu1 %v594_v56 }
 0x380   : > { %v582_v59 = vpop.xlane.xlu1 %581 }
 0x381   : > { %vm583_vm5 = vcmp.eq.f32.partialorder %v580_v53, %v582_v59  ;;  %v588_v1 = vcvt.f32.s32 %v582_v59 }
 0x382   : > { %v584_v61 = vsel %vm583_vm5, %v579_v60, inf }
 0x383   : > { %585 = vmin.xlane.f32.xlu0 %v584_v61  ;;  %v589_v3 = vshll.u32 %v588_v1, 16 }
 0x384   : > { %v596_v62 = vpop.xlane.xlu1 %595 }
 0x385   : > { %vm597_vm6 = vcmp.eq.f32.partialorder %v594_v56, %v596_v62  ;;  %v602_v4 = vcvt.f32.s32 %v596_v62 }
 0x386   : > { %v598_v0 = vsel %vm597_vm6, %v593_v63, inf }
 0x387   : > { %599 = vmin.xlane.f32.xlu1 %v598_v0  ;;  %v603_v8 = vshll.u32 %v602_v4, 16 }
 0x410   : > { %v586_v2 = vpop.xlane.xlu0 %585 }
 0x411   : > { %v587_v5 = vcvt.f32.s32 %v586_v2 }
 0x413   : > { %v590_v6 = vadd.s32 %v589_v3, %v587_v5 }
 0x414   : > { %v600_v7 = vpop.xlane.xlu1 %599 }
 0x415   : > { %606 = vst.msk [vmem:[%s287_s12] sm:$0xff] %vm605_vm7, %v590_v6  ;;  %v601_v9 = vcvt.f32.s32 %v600_v7 }
 0x417   : > { %v604_v10 = vadd.s32 %v603_v8, %v601_v9 }
 0x419   : > { %607 = vst.msk [vmem:[%s287_s12 + $0x8] sm:$0xff] %vm605_vm7, %v604_v10 }
 0x41a PF: > { %p16_p3 = scmp.ge.s32.totalorder %s1039_s23, 5   ;;  %s1257_s18 = smov %s969_s19 }
 0x41b   : > { %s1258_s19 = smov %s973_s20  ;;  %s1259_s20 = smov %s1049_s26 }
 0x41c   : > { %s1260_s21 = smov %s1039_s23  ;;  %18 = sbr.rel (!%p16_p3) target bundleno = 4 (0x4), region = 88 }
 0x423   :  { %630 = vsyncpa [#allocation3], 1 }
 0x424   :  { %632 = vsyncpa [#allocation3 + $0x1], 1 }
 0x425   :  { %633 = vsyncpa [#allocation5], 1 }

</bundles_post_ra>
